<compile_context>
chip_gen: v7x
topology: tpu7x:2x2x1
jax: 0.10.0
libtpu: 0.0.40
codegen_flags: <defaults>
</compile_context>

<pallas_src>
import numpy as np
import jax
import jax.numpy as jnp
from jax.experimental import pallas as pl
from jax.experimental.pallas import tpu as pltpu

NQ = 4           # qubits
DIM = 2 ** NQ    # 16


# -------------------- circuit unitary (parameter setup, plain JAX) ------------

def _ry(t):
    c, s = jnp.cos(t / 2), jnp.sin(t / 2)
    return jnp.stack([jnp.stack([c, -s]), jnp.stack([s, c])]).astype(jnp.complex64)


def _rz(t):
    c, s = jnp.cos(t / 2), jnp.sin(t / 2)
    em = (c - 1j * s).astype(jnp.complex64)
    ep = (c + 1j * s).astype(jnp.complex64)
    z = jnp.zeros((), jnp.complex64)
    return jnp.stack([jnp.stack([em, z]), jnp.stack([z, ep])])


def _kron_all(mats):
    out = mats[0]
    for m in mats[1:]:
        out = jnp.kron(out, m)
    return out


def _yzy_layer(params):
    # params: (3*NQ,) grouped as [Ry_1 x NQ, Rz x NQ, Ry_2 x NQ]
    # TODO(synk): deepquantum's exact per-wire parameter ordering inside YZYLayer
    # is assumed (grouped convention); the gate sequence Ry->Rz->Ry matches.
    mats = []
    for q in range(NQ):
        a, b, c = params[q], params[NQ + q], params[2 * NQ + q]
        mats.append(_ry(c) @ _rz(b) @ _ry(a))
    return _kron_all(mats)


def _cnot_full(ctrl, tgt):
    m = np.zeros((DIM, DIM), np.complex64)
    for b in range(DIM):
        cb = (b >> (NQ - 1 - ctrl)) & 1
        m[b ^ (cb << (NQ - 1 - tgt)), b] = 1.0
    return jnp.asarray(m)


def build_circuit_unitary(weight):
    """5x YZY layers interleaved with 4x ring_of_cnot, as in Net.forward."""
    ring = _cnot_full(3, 0) @ _cnot_full(2, 3) @ _cnot_full(1, 2) @ _cnot_full(0, 1)
    u = _yzy_layer(weight[0:3 * NQ])
    for layer in range(1, 5):
        u = ring @ u
        u = _yzy_layer(weight[3 * NQ * layer:3 * NQ * (layer + 1)]) @ u
    return u  # (16, 16) complex64


def _basis_tables():
    bits = np.zeros((NQ, DIM), np.float32)          # bits[q, b] (qubit 0 = MSB)
    for b in range(DIM):
        for q in range(NQ):
            bits[q, b] = (b >> (NQ - 1 - q)) & 1
    pop = bits.sum(axis=0).astype(np.int32)
    ph = np.array([(-1j) ** int(k) for k in pop], np.complex64)   # (-i)^popcount
    zsigns_t = (1.0 - 2.0 * bits).astype(np.float32)              # (NQ, DIM)
    return ph, zsigns_t


# -------------------- Pallas kernels (hot path) --------------------------------

def quanv_kernel(ang_ref, vpk_ref, zst_ref, out_ref):
    ang = ang_ref[...]                     # (4, TL) encoding angles (already *2pi)
    c = jnp.cos(0.5 * ang)                 # Rx(theta)|0> amplitudes
    s = jnp.sin(0.5 * ang)

    c0, c1, c2, c3 = c[0:1], c[1:2], c[2:3], c[3:4]   # (1, TL) rows
    s0, s1, s2, s3 = s[0:1], s[1:2], s[2:3], s[3:4]
    # kron split: basis b = b0b1b2b3 (MSB first); mag[b] = p01[b0b1] * p23[b2b3]
    p01 = (c0 * c1, c0 * s1, s0 * c1, s0 * s1)
    p23 = (c2 * c3, c2 * s3, s2 * c3, s2 * s3)
    mag = jnp.concatenate([a * b for a in p01 for b in p23], axis=0)   # (16, TL)

    # V_packed = [Re(U @ diag(ph)); Im(U @ diag(ph))] -> one real matmul gives
    # both real and imaginary parts of the evolved state.
    out_c = jnp.dot(vpk_ref[...], mag, preferred_element_type=jnp.float32)  # (32, TL)
    o_re = out_c[0:DIM, :]
    o_im = out_c[DIM:2 * DIM, :]
    probs = o_re * o_re + o_im * o_im                                 # (16, TL)

    # <Z_q> = sum_b (1 - 2*bit_q(b)) * |psi'_b|^2
    out_ref[...] = jnp.dot(zst_ref[...], probs,
                           preferred_element_type=jnp.float32)        # (4, TL)


def mlp_kernel(x_ref, w1_ref, b1_ref, w2_ref, b2_ref, out_ref):
    h = jnp.dot(x_ref[...], w1_ref[...],
                preferred_element_type=jnp.float32) + b1_ref[...]
    h = jnp.maximum(h, 0.0)
    out_ref[...] = jnp.dot(h, w2_ref[...],
                           preferred_element_type=jnp.float32) + b2_ref[...]


# -------------------- wrappers --------------------------------------------------

def _choose_tile(L, max_tile=512):
    # Amortize per-step pipeline overhead but keep >= 2 grid steps when possible
    # so both v7x TensorCores get work via the "parallel" grid axis.
    half = (L + 1) // 2
    t = ((half + 127) // 128) * 128
    return max(128, min(max_tile, t))


def quanv_expectations(angles_t, vpacked, zst, tile=None):
    """angles_t: (4, L) lane-major. Returns (4, L) PauliZ expectations."""
    L = angles_t.shape[1]
    if tile is None:
        tile = _choose_tile(L)
    Lp = ((L + tile - 1) // tile) * tile
    ang_p = angles_t if Lp == L else (
        jnp.zeros((NQ, Lp), jnp.float32).at[:, :L].set(angles_t))
    out = pl.pallas_call(
        quanv_kernel,
        out_shape=jax.ShapeDtypeStruct((NQ, Lp), jnp.float32),
        grid=(Lp // tile,),
        in_specs=[
            pl.BlockSpec((NQ, tile), lambda i: (0, i)),
            pl.BlockSpec((2 * DIM, DIM), lambda i: (0, 0)),
            pl.BlockSpec((NQ, DIM), lambda i: (0, 0)),
        ],
        out_specs=pl.BlockSpec((NQ, tile), lambda i: (0, i)),
        compiler_params=pltpu.CompilerParams(dimension_semantics=("parallel",)),
    )(ang_p, vpacked, zst)
    return out[:, :L]


def mlp_forward(feats, w1, b1, w2, b2):
    B, F = feats.shape
    n_out = w2.shape[1]
    n_pad = 128                                     # lane-dense fc2 output
    w2p = jnp.zeros((w2.shape[0], n_pad), jnp.float32).at[:, :n_out].set(w2)
    b2p = jnp.zeros((1, n_pad), jnp.float32).at[:, :n_out].set(b2)

    bt = min(128, B)
    Bp = ((B + bt - 1) // bt) * bt
    fp = feats if Bp == B else jnp.zeros((Bp, F), jnp.float32).at[:B].set(feats)

    out = pl.pallas_call(
        mlp_kernel,
        out_shape=jax.ShapeDtypeStruct((Bp, n_pad), jnp.float32),
        grid=(Bp // bt,),
        in_specs=[
            pl.BlockSpec((bt, F), lambda i: (i, 0)),
            pl.BlockSpec(w1.shape, lambda i: (0, 0)),
            pl.BlockSpec(b1.shape, lambda i: (0, 0)),
            pl.BlockSpec(w2p.shape, lambda i: (0, 0)),
            pl.BlockSpec(b2p.shape, lambda i: (0, 0)),
        ],
        out_specs=pl.BlockSpec((bt, n_pad), lambda i: (i, 0)),
        compiler_params=pltpu.CompilerParams(dimension_semantics=("parallel",)),
    )(fp, w1, b1, w2p, b2p)
    return out[:B, :n_out]


def net_forward(x, weight, w1, b1, w2, b2):
    # x: (B, 1, H, W) NCHW, H = W = 28 (required by fc1 = Linear(14*14*4, 64))
    B, _, H, W = x.shape
    xs = (2.0 * jnp.pi * x)[:, 0]                                   # (B, H, W)
    patches = (xs.reshape(B, H // 2, 2, W // 2, 2)
               .transpose(0, 1, 3, 2, 4)
               .reshape(B * (H // 2) * (W // 2), 4)).astype(jnp.float32)
    angles_t = patches.T                                            # (4, L) lane-major

    u = build_circuit_unitary(weight)                               # (16,16) complex64
    ph_np, zst_np = _basis_tables()
    v = u * jnp.asarray(ph_np)[None, :]          # fold (-i)^popcount phase into U
    vpacked = jnp.concatenate([jnp.real(v), jnp.imag(v)],
                              axis=0).astype(jnp.float32)           # (32, 16)
    zst = jnp.asarray(zst_np)                                       # (4, 16)

    exps = quanv_expectations(angles_t, vpacked, zst)               # (4, L)
    # patch-major, qubit-minor flatten (matches torch cat+reshape)
    feats = exps.T.reshape(B, -1)                                   # (B, 14*14*4)
    return mlp_forward(feats, w1, b1, w2, b2)


# -------------------- main -------------------------------------------------------

if __name__ == "__main__":
    key = jax.random.PRNGKey(0)
    kx, kw, k1w, k1b, k2w, k2b = jax.random.split(key, 6)

    B, H, W = 2, 28, 28           # small batch; 28x28 required by fc1 (14*14*4 = 784)
    x = jax.random.uniform(kx, (B, 1, H, W), jnp.float32)

    # quantum circuit weights ~ U(0, 2*pi), like nn.init.uniform_(..., 0, 2*pi)
    weight = jax.random.uniform(kw, (15 * NQ,), jnp.float32,
                                minval=0.0, maxval=2.0 * np.pi)

    fan_in1 = (H // 2) * (W // 2) * NQ   # 784
    lim1 = 1.0 / np.sqrt(fan_in1)
    w1 = jax.random.uniform(k1w, (fan_in1, 64), jnp.float32, minval=-lim1, maxval=lim1)
    b1 = jax.random.uniform(k1b, (1, 64), jnp.float32, minval=-lim1, maxval=lim1)
    lim2 = 1.0 / np.sqrt(64.0)
    w2 = jax.random.uniform(k2w, (64, 10), jnp.float32, minval=-lim2, maxval=lim2)
    b2 = jax.random.uniform(k2b, (1, 10), jnp.float32, minval=-lim2, maxval=lim2)

    fwd = jax.jit(net_forward)
    out = fwd(x, weight, w1, b1, w2, b2)
    out = jax.block_until_ready(out)
    assert out.shape == (B, 10) and out.dtype == jnp.float32
    print("KERNEL_OK")
</pallas_src>

<mosaic_0001>
module attributes {stable_mosaic.version = 11 : i64} {
  func.func @quanv_kernel(%arg0: i32, %arg1: memref<4x256xf32, #tpu.memory_space<vmem>>, %arg2: memref<32x16xf32, #tpu.memory_space<vmem>>, %arg3: memref<4x16xf32, #tpu.memory_space<vmem>>, %arg4: memref<4x256xf32, #tpu.memory_space<vmem>>) attributes {dimension_semantics = [#tpu.dimension_semantics<parallel>], iteration_bounds = array<i64: 2>, scalar_prefetch = 0 : i64, scratch_operands = 0 : i64, tpu.core_type = #tpu.core_type<tc>, window_params = [{transform_indices = @transform_0, window_bounds = array<i64: 4, 256>}, {pipeline_mode = #tpu.pipeline_mode<synchronous>, transform_indices = @transform_1, window_bounds = array<i64: 32, 16>}, {pipeline_mode = #tpu.pipeline_mode<synchronous>, transform_indices = @transform_2, window_bounds = array<i64: 4, 16>}, {transform_indices = @transform_3, window_bounds = array<i64: 4, 256>}]} {
    %c0 = arith.constant 0 : index
    %c0_0 = arith.constant 0 : index
    %0 = vector.load %arg1[%c0, %c0_0] : memref<4x256xf32, #tpu.memory_space<vmem>>, vector<4x256xf32>
    %cst = arith.constant 5.000000e-01 : f32
    %1 = vector.broadcast %cst : f32 to vector<4x256xf32>
    %2 = arith.mulf %1, %0 : vector<4x256xf32>
    %3 = math.cos %2 : vector<4x256xf32>
    %cst_1 = arith.constant 5.000000e-01 : f32
    %4 = vector.broadcast %cst_1 : f32 to vector<4x256xf32>
    %5 = arith.mulf %4, %0 : vector<4x256xf32>
    %6 = math.sin %5 : vector<4x256xf32>
    %7 = vector.extract_strided_slice %3 {offsets = [0, 0], sizes = [1, 256], strides = [1, 1]} : vector<4x256xf32> to vector<1x256xf32>
    %8 = vector.extract_strided_slice %3 {offsets = [1, 0], sizes = [1, 256], strides = [1, 1]} : vector<4x256xf32> to vector<1x256xf32>
    %9 = vector.extract_strided_slice %3 {offsets = [2, 0], sizes = [1, 256], strides = [1, 1]} : vector<4x256xf32> to vector<1x256xf32>
    %10 = vector.extract_strided_slice %3 {offsets = [3, 0], sizes = [1, 256], strides = [1, 1]} : vector<4x256xf32> to vector<1x256xf32>
    %11 = vector.extract_strided_slice %6 {offsets = [0, 0], sizes = [1, 256], strides = [1, 1]} : vector<4x256xf32> to vector<1x256xf32>
    %12 = vector.extract_strided_slice %6 {offsets = [1, 0], sizes = [1, 256], strides = [1, 1]} : vector<4x256xf32> to vector<1x256xf32>
    %13 = vector.extract_strided_slice %6 {offsets = [2, 0], sizes = [1, 256], strides = [1, 1]} : vector<4x256xf32> to vector<1x256xf32>
    %14 = vector.extract_strided_slice %6 {offsets = [3, 0], sizes = [1, 256], strides = [1, 1]} : vector<4x256xf32> to vector<1x256xf32>
    %15 = arith.mulf %7, %8 : vector<1x256xf32>
    %16 = arith.mulf %7, %12 : vector<1x256xf32>
    %17 = arith.mulf %11, %8 : vector<1x256xf32>
    %18 = arith.mulf %11, %12 : vector<1x256xf32>
    %19 = arith.mulf %9, %10 : vector<1x256xf32>
    %20 = arith.mulf %9, %14 : vector<1x256xf32>
    %21 = arith.mulf %13, %10 : vector<1x256xf32>
    %22 = arith.mulf %13, %14 : vector<1x256xf32>
    %23 = arith.mulf %15, %19 : vector<1x256xf32>
    %24 = arith.mulf %15, %20 : vector<1x256xf32>
    %25 = arith.mulf %15, %21 : vector<1x256xf32>
    %26 = arith.mulf %15, %22 : vector<1x256xf32>
    %27 = arith.mulf %16, %19 : vector<1x256xf32>
    %28 = arith.mulf %16, %20 : vector<1x256xf32>
    %29 = arith.mulf %16, %21 : vector<1x256xf32>
    %30 = arith.mulf %16, %22 : vector<1x256xf32>
    %31 = arith.mulf %17, %19 : vector<1x256xf32>
    %32 = arith.mulf %17, %20 : vector<1x256xf32>
    %33 = arith.mulf %17, %21 : vector<1x256xf32>
    %34 = arith.mulf %17, %22 : vector<1x256xf32>
    %35 = arith.mulf %18, %19 : vector<1x256xf32>
    %36 = arith.mulf %18, %20 : vector<1x256xf32>
    %37 = arith.mulf %18, %21 : vector<1x256xf32>
    %38 = arith.mulf %18, %22 : vector<1x256xf32>
    %39 = tpu.concatenate %23, %24, %25, %26, %27, %28, %29, %30, %31, %32, %33, %34, %35, %36, %37, %38 in 0 : vector<1x256xf32>, vector<1x256xf32>, vector<1x256xf32>, vector<1x256xf32>, vector<1x256xf32>, vector<1x256xf32>, vector<1x256xf32>, vector<1x256xf32>, vector<1x256xf32>, vector<1x256xf32>, vector<1x256xf32>, vector<1x256xf32>, vector<1x256xf32>, vector<1x256xf32>, vector<1x256xf32>, vector<1x256xf32> -> vector<16x256xf32>
    %c0_2 = arith.constant 0 : index
    %c0_3 = arith.constant 0 : index
    %40 = vector.load %arg2[%c0_2, %c0_3] : memref<32x16xf32, #tpu.memory_space<vmem>>, vector<32x16xf32>
    %cst_4 = arith.constant dense<0.000000e+00> : vector<32x256xf32>
    %41 = tpu.matmul %40, %39, %cst_4 {dimension_numbers = #tpu.dot_dimension_numbers<[1], [0], [0], [1], [0, 0, 1, 1], [], []>} : vector<32x16xf32>, vector<16x256xf32>, vector<32x256xf32> -> vector<32x256xf32>
    %42 = vector.extract_strided_slice %41 {offsets = [0, 0], sizes = [16, 256], strides = [1, 1]} : vector<32x256xf32> to vector<16x256xf32>
    %43 = vector.extract_strided_slice %41 {offsets = [16, 0], sizes = [16, 256], strides = [1, 1]} : vector<32x256xf32> to vector<16x256xf32>
    %44 = arith.mulf %42, %42 : vector<16x256xf32>
    %45 = arith.mulf %43, %43 : vector<16x256xf32>
    %46 = arith.addf %44, %45 : vector<16x256xf32>
    %c0_5 = arith.constant 0 : index
    %c0_6 = arith.constant 0 : index
    %47 = vector.load %arg3[%c0_5, %c0_6] : memref<4x16xf32, #tpu.memory_space<vmem>>, vector<4x16xf32>
    %cst_7 = arith.constant dense<0.000000e+00> : vector<4x256xf32>
    %48 = tpu.matmul %47, %46, %cst_7 {dimension_numbers = #tpu.dot_dimension_numbers<[1], [0], [0], [1], [0, 0, 1, 1], [], []>} : vector<4x16xf32>, vector<16x256xf32>, vector<4x256xf32> -> vector<4x256xf32>
    %c0_8 = arith.constant 0 : index
    %c0_9 = arith.constant 0 : index
    %49 = vector.load %arg4[%c0_8, %c0_9] : memref<4x256xf32, #tpu.memory_space<vmem>>, vector<4x256xf32>
    tpu.vector_store %arg4[%c0_8, %c0_9], %48 {strides = array<i32>} : memref<4x256xf32, #tpu.memory_space<vmem>>, vector<4x256xf32>,
    return
  }
  func.func @transform_0(%arg0: i32) -> (i32, i32) {
    %c0_i32 = arith.constant 0 : i32
    %c0_i32_0 = arith.constant 0 : i32
    return %c0_i32, %arg0 : i32, i32
  }
  func.func @transform_1(%arg0: i32) -> (i32, i32) {
    %c0_i32 = arith.constant 0 : i32
    %c0_i32_0 = arith.constant 0 : i32
    %c0_i32_1 = arith.constant 0 : i32
    return %c0_i32, %c0_i32_0 : i32, i32
  }
  func.func @transform_2(%arg0: i32) -> (i32, i32) {
    %c0_i32 = arith.constant 0 : i32
    %c0_i32_0 = arith.constant 0 : i32
    %c0_i32_1 = arith.constant 0 : i32
    return %c0_i32, %c0_i32_0 : i32, i32
  }
  func.func @transform_3(%arg0: i32) -> (i32, i32) {
    %c0_i32 = arith.constant 0 : i32
    %c0_i32_0 = arith.constant 0 : i32
    return %c0_i32, %arg0 : i32, i32
  }
}

module attributes {stable_mosaic.version = 11 : i64} {
  func.func @mlp_kernel(%arg0: i32, %arg1: memref<2x784xf32, #tpu.memory_space<vmem>>, %arg2: memref<784x64xf32, #tpu.memory_space<vmem>>, %arg3: memref<1x64xf32, #tpu.memory_space<vmem>>, %arg4: memref<64x128xf32, #tpu.memory_space<vmem>>, %arg5: memref<1x128xf32, #tpu.memory_space<vmem>>, %arg6: memref<2x128xf32, #tpu.memory_space<vmem>>) attributes {dimension_semantics = [#tpu.dimension_semantics<parallel>], iteration_bounds = array<i64: 1>, scalar_prefetch = 0 : i64, scratch_operands = 0 : i64, tpu.core_type = #tpu.core_type<tc>, window_params = [{transform_indices = @transform_0, window_bounds = array<i64: 2, 784>}, {pipeline_mode = #tpu.pipeline_mode<synchronous>, transform_indices = @transform_1, window_bounds = array<i64: 784, 64>}, {pipeline_mode = #tpu.pipeline_mode<synchronous>, transform_indices = @transform_2, window_bounds = array<i64: 1, 64>}, {pipeline_mode = #tpu.pipeline_mode<synchronous>, transform_indices = @transform_3, window_bounds = array<i64: 64, 128>}, {pipeline_mode = #tpu.pipeline_mode<synchronous>, transform_indices = @transform_4, window_bounds = array<i64: 1, 128>}, {transform_indices = @transform_5, window_bounds = array<i64: 2, 128>}]} {
    %c0 = arith.constant 0 : index
    %c0_0 = arith.constant 0 : index
    %0 = vector.load %arg1[%c0, %c0_0] : memref<2x784xf32, #tpu.memory_space<vmem>>, vector<2x784xf32>
    %c0_1 = arith.constant 0 : index
    %c0_2 = arith.constant 0 : index
    %1 = vector.load %arg2[%c0_1, %c0_2] : memref<784x64xf32, #tpu.memory_space<vmem>>, vector<784x64xf32>
    %cst = arith.constant dense<0.000000e+00> : vector<2x64xf32>
    %2 = tpu.matmul %0, %1, %cst {dimension_numbers = #tpu.dot_dimension_numbers<[1], [0], [0], [1], [0, 0, 1, 1], [], []>} : vector<2x784xf32>, vector<784x64xf32>, vector<2x64xf32> -> vector<2x64xf32>
    %c0_3 = arith.constant 0 : index
    %c0_4 = arith.constant 0 : index
    %3 = vector.load %arg3[%c0_3, %c0_4] : memref<1x64xf32, #tpu.memory_space<vmem>>, vector<1x64xf32>
    %4 = vector.broadcast %3 : vector<1x64xf32> to vector<2x64xf32>
    %5 = arith.addf %2, %4 : vector<2x64xf32>
    %cst_5 = arith.constant 0.000000e+00 : f32
    %6 = vector.broadcast %cst_5 : f32 to vector<2x64xf32>
    %7 = arith.maximumf %5, %6 : vector<2x64xf32>
    %c0_6 = arith.constant 0 : index
    %c0_7 = arith.constant 0 : index
    %8 = vector.load %arg4[%c0_6, %c0_7] : memref<64x128xf32, #tpu.memory_space<vmem>>, vector<64x128xf32>
    %cst_8 = arith.constant dense<0.000000e+00> : vector<2x128xf32>
    %9 = tpu.matmul %7, %8, %cst_8 {dimension_numbers = #tpu.dot_dimension_numbers<[1], [0], [0], [1], [0, 0, 1, 1], [], []>} : vector<2x64xf32>, vector<64x128xf32>, vector<2x128xf32> -> vector<2x128xf32>
    %c0_9 = arith.constant 0 : index
    %c0_10 = arith.constant 0 : index
    %10 = vector.load %arg5[%c0_9, %c0_10] : memref<1x128xf32, #tpu.memory_space<vmem>>, vector<1x128xf32>
    %11 = vector.broadcast %10 : vector<1x128xf32> to vector<2x128xf32>
    %12 = arith.addf %9, %11 : vector<2x128xf32>
    %c0_11 = arith.constant 0 : index
    %c0_12 = arith.constant 0 : index
    %13 = vector.load %arg6[%c0_11, %c0_12] : memref<2x128xf32, #tpu.memory_space<vmem>>, vector<2x128xf32>
    tpu.vector_store %arg6[%c0_11, %c0_12], %12 {strides = array<i32>} : memref<2x128xf32, #tpu.memory_space<vmem>>, vector<2x128xf32>,
    return
  }
  func.func @transform_0(%arg0: i32) -> (i32, i32) {
    %c0_i32 = arith.constant 0 : i32
    %c0_i32_0 = arith.constant 0 : i32
    return %arg0, %c0_i32 : i32, i32
  }
  func.func @transform_1(%arg0: i32) -> (i32, i32) {
    %c0_i32 = arith.constant 0 : i32
    %c0_i32_0 = arith.constant 0 : i32
    %c0_i32_1 = arith.constant 0 : i32
    return %c0_i32, %c0_i32_0 : i32, i32
  }
  func.func @transform_2(%arg0: i32) -> (i32, i32) {
    %c0_i32 = arith.constant 0 : i32
    %c0_i32_0 = arith.constant 0 : i32
    %c0_i32_1 = arith.constant 0 : i32
    return %c0_i32, %c0_i32_0 : i32, i32
  }
  func.func @transform_3(%arg0: i32) -> (i32, i32) {
    %c0_i32 = arith.constant 0 : i32
    %c0_i32_0 = arith.constant 0 : i32
    %c0_i32_1 = arith.constant 0 : i32
    return %c0_i32, %c0_i32_0 : i32, i32
  }
  func.func @transform_4(%arg0: i32) -> (i32, i32) {
    %c0_i32 = arith.constant 0 : i32
    %c0_i32_0 = arith.constant 0 : i32
    %c0_i32_1 = arith.constant 0 : i32
    return %c0_i32, %c0_i32_0 : i32, i32
  }
  func.func @transform_5(%arg0: i32) -> (i32, i32) {
    %c0_i32 = arith.constant 0 : i32
    %c0_i32_0 = arith.constant 0 : i32
    return %arg0, %c0_i32 : i32, i32
  }
}

</mosaic_0001>

<bundles_post_ra>
// kernel: net_forward.2
= control target key start
LH: loop header
LB: loop body
LE: loop exit
PB: predicated region body
PF: predicated region fallthrough
CT: control target
= control target key end

     0   :  { %s984_s12 = smov 0   ;;  %s1160_s0 = inlined_call_operand.vmem [shape: f32[4,512], index: 0, kind: input, shape index: {}]   ;;  %s1161_s1 = inlined_call_operand.vmem [shape: f32[32,16], index: 1, kind: input, shape index: {}]   ;;  %s1162_s2 = inlined_call_operand.vmem [shape: f32[4,16], index: 2, kind: input, shape index: {}]   ;;  %s1163_s3 = inlined_call_operand.vmem [shape: f32[4,512], index: 3, kind: output, shape index: {}]  }
   0x1 LB: > { %s892_s13 = sadd.s32 4294967295, %s955_s12   ;;  %p896_p0 = scmp.ge.s32.totalorder %s955_s12, 1  ;;  %s955_s12 = sphi %s984_s12, %s13_s12  }
   0x2   : > { %p138_p1 = scmp.lt.s32.totalorder %s955_s12, 3 }
   0x4   : > { %p139_p2 = pnand %p896_p0, %p138_p1 }
   0x5   : > { %s897_s14 = sshll.u32 (!%p139_p2), %s892_s13, 1  ;;  %v957_v0 = vmov (!%p139_p2), 0.0   ;;  %v958_v14 = vmov (!%p139_p2), 683565275   ;;  %v959_v16 = vmov (!%p139_p2), 2475754826  }
   0x6   : > { %142 = sbr.rel (%p139_p2) target bundleno = 583 (0x247), region = 32  ;;  %p163_p3 = scmp.lt.s32.totalorder (!%p139_p2), %s897_s14, 3  ;;  %719 = vmatprep.mubr.f32.mxu0 (!%p139_p2), %v957_v0  ;;  %737 = vmatprep.mubr.f32.mxu1 (!%p139_p2), %v957_v0  ;;  %v960_v18 = vmov (!%p139_p2), 2131351028   ;;  %v961_v20 = vmov (!%p139_p2), 2102212464  }
   0x7   : > { %v962_v22 = vmov (!%p139_p2), 920167782   ;;  %v963_v29 = vmov (!%p139_p2), 1326507024  }
   0xd   : > { %s1165_s14 = smov (!%p163_p3, %s897_s14), 3 }
   0xe   : > { %s898_s15 = sshll.u32 %s1165_s14, 2 }
   0xf   : > { %s166_s18 = scalar_lea.vmem %s1160_s0, %s898_s15  ;;  %s172_s4 = scalar_lea.vmem %s1163_s3, %s898_s15 }
  0x10   : > { %v174_v1 = vld [vmem:[%s166_s18] sm:$0xff] }
  0x11   : > { %v1002_v2 = vmul.f32 0.5, %v174_v1 }
  0x13   : > { %v179_v3 = vand.u32 2139095040, %v1002_v2  ;;  %v176_v5 = vand.u32 2147483647, %v1002_v2  ;;  %vm178_vm7 = vcmp.lt.s32.totalorder %v1002_v2, 0  ;;  %vm268_vm15 = vweird.f32 %v1002_v2 }
  0x15   : > { %v180_v4 = vshrl.u32 %v179_v3, 23  ;;  %v183_v8 = vand.u32 8388607, %v176_v5  ;;  %vm177_vm8 = vcmp.le.f32.partialorder %v176_v5, 0.7853982 }
  0x17   : > { %v901_v6 = vadd.s32 4294967169, %v180_v4  ;;  %v184_v11 = vor.u32 8388608, %v183_v8 }
  0x19   : > { %v186_v7 = vadd.s32 1, %v901_v6  ;;  %v224_v31 = vshll.u32 %v184_v11, 8 }
  0x1b   : > { %vm187_vm0 = vcmp.gt.s32.totalorder %v186_v7, 0 }
  0x1c   : > { %v188_v9 = vsel %vm187_vm0, %v186_v7, 0  ;;  %vm603_vm0 = vcmask 1040384  }
  0x1d   : > { %v190_v10 = vand.u32 31, %v188_v9  ;;  %v189_v12 = vshrl.u32 %v188_v9, 5 }
  0x1f   : > { %v191_v13 = vsub.s32 32, %v190_v10  ;;  %v193_v15 = vshll.u32 %v958_v14, %v190_v10  ;;  %v196_v17 = vshll.u32 %v959_v16, %v190_v10  ;;  %v199_v19 = vshll.u32 %v960_v18, %v190_v10 }
  0x20   : > { %v202_v21 = vshll.u32 %v961_v20, %v190_v10  ;;  %v205_v23 = vshll.u32 %v962_v22, %v190_v10  ;;  %vm208_vm1 = vcmp.lt.s32.totalorder %v189_v12, 1  ;;  %vm211_vm2 = vcmp.lt.s32.totalorder %v189_v12, 4 }
  0x21   : > { %v192_v24 = vshrl.u32 %v958_v14, %v191_v13  ;;  %v194_v25 = vshrl.u32 %v959_v16, %v191_v13  ;;  %v197_v26 = vshrl.u32 %v960_v18, %v191_v13  ;;  %v200_v27 = vshrl.u32 %v961_v20, %v191_v13 }
  0x22   : > { %v203_v28 = vshrl.u32 %v962_v22, %v191_v13  ;;  %v206_v30 = vshrl.u32 %v963_v29, %v191_v13  ;;  %vm209_vm3 = vcmp.lt.s32.totalorder %v189_v12, 2  ;;  %vm210_vm4 = vcmp.lt.s32.totalorder %v189_v12, 3 }
  0x23   : > { %v195_v32 = vor.u32 %v194_v25, %v193_v15  ;;  %v198_v33 = vor.u32 %v197_v26, %v196_v17  ;;  %v201_v34 = vor.u32 %v200_v27, %v199_v19 }
  0x24   : > { %v204_v35 = vor.u32 %v203_v28, %v202_v21  ;;  %v207_v36 = vor.u32 %v206_v30, %v205_v23 }
  0x25   : > { %v212_v37 = vsel %vm208_vm1, %v192_v24, %v195_v32  ;;  %v213_v38 = vsel %vm211_vm2, %v201_v34, 2102212464  ;;  %v216_v39 = vsel %vm208_vm1, %v195_v32, %v198_v33  ;;  %v220_v40 = vsel %vm208_vm1, %v198_v33, %v201_v34 }
  0x26   : > { %v214_v41 = vsel %vm210_vm4, %v198_v33, %v213_v38  ;;  %v217_v42 = vsel %vm211_vm2, %v204_v35, 920167782  ;;  %v221_v43 = vsel %vm211_vm2, %v207_v36, 1326507024  ;;  %vm606_vm1 = vcmask 1041408  }
  0x27   : > { %v218_v44 = vsel %vm210_vm4, %v201_v34, %v217_v42  ;;  %v222_v45 = vsel %vm210_vm4, %v204_v35, %v221_v43  ;;  %v215_v46 = vsel %vm209_vm3, %v212_v37, %v214_v41  ;;  %vm609_vm2 = vcmask 1042432  }
  0x28   : > { %v219_v47 = vsel %vm209_vm3, %v216_v39, %v218_v44  ;;  %v223_v48 = vsel %vm209_vm3, %v220_v40, %v222_v45  ;;  %v231_v53 = vmul.u32 %v224_v31, %v215_v46  ;;  %v428_v39 = vlaneseq }
  0x29   : > { %v1008_v49 = vmul.u32.u64.low %v224_v31, %v223_v48  ;;  %v1009_v50 = vmul.u32.u64.high %v224_v31, %v223_v48, %v1008_v49  ;;  %v1011_v51 = vmul.u32.u64.low %v224_v31, %v219_v47  ;;  %v1012_v52 = vmul.u32.u64.high %v224_v31, %v219_v47, %v1011_v51 }
  0x2a   : > { %v429_v46 = vshrl.u32 %v428_v39, 7  ;;  %vm612_vm3 = vcmask 1043456   ;;  %vm615_vm4 = vcmask 1044480  }
  0x2b   : > { %vm233_vm5 = vc.u32 %v1009_v50, %v1011_v51  ;;  %v234_v54 = vadd.s32 1, %v1012_v52  ;;  %v232_v3 = vadd.s32 %v1011_v51, %v1009_v50 }
  0x2d   : > { %v235_v55 = vsel %vm233_vm5, %v234_v54, %v1012_v52  ;;  %vm618_vm5 = vcmask 1045504  }
  0x2e   : > { %v236_v56 = vadd.s32 %v235_v55, %v231_v53 }
  0x30   : > { %v237_v57 = vadd.s32 536870912, %v236_v56 }
  0x32   : > { %v238_v58 = vshrl.u32 %v237_v57, 30 }
  0x34   : > { %v239_v59 = vshll.u32 %v238_v58, 30  ;;  %v262_v16 = vsub.s32 4, %v238_v58 }
  0x36   : > { %v240_v60 = vsub.s32 %v236_v56, %v239_v59  ;;  %v263_v19 = vsel %vm178_vm7, %v262_v16, %v238_v58  ;;  %v434_v56 = vsub.s32 4, %v429_v46  ;;  %v1031_v59 = vsub.s32 0, %v429_v46 }
  0x37   : > { %v265_v22 = vsel %vm177_vm8, 0, %v263_v19 }
  0x38   : > { %v242_v61 = vsub.s32 0, %v240_v60  ;;  %v372_v23 = vadd.s32 3, %v265_v22  ;;  %v269_v24 = vand.u32 3, %v265_v22 }
  0x3a   : > { %v902_v62 = vmin.u32 %v242_v61, %v240_v60  ;;  %v373_v25 = vand.u32 3, %v372_v23  ;;  %vm274_vm9 = vcmp.eq.s32.totalorder %v269_v24, 2  ;;  %vm271_vm11 = vcmp.eq.s32.totalorder %v269_v24, 0 }
  0x3b   : > { %vm270_vm13 = vcmp.lt.s32.totalorder %v269_v24, 2 }
  0x3c   : > { %v244_v63 = vclz %v902_v62  ;;  %vm378_vm10 = vcmp.eq.s32.totalorder %v373_v25, 2  ;;  %vm375_vm12 = vcmp.eq.s32.totalorder %v373_v25, 0  ;;  %vm374_vm14 = vcmp.lt.s32.totalorder %v373_v25, 2 }
  0x3e   : > { %v903_v1 = vadd.s32 4294967294, %v244_v63 }
  0x40   : > { %vm904_vm6 = vcmp.lt.s32.totalorder %v903_v1, 0 }
  0x41   : > { %v247_v4 = vsel %vm904_vm6, 0, %v903_v1  ;;  %vm621_vm6 = vcmask 1046528  }
  0x42   : > { %v248_v6 = vsub.s32 32, %v247_v4  ;;  %v249_v7 = vshll.u32 %v240_v60, %v247_v4  ;;  %v252_v8 = vsub.s32 4294967266, %v247_v4 }
  0x44   : > { %v250_v9 = vshrl.u32 %v232_v3, %v248_v6  ;;  %v253_v10 = vadd.s32 127, %v252_v8 }
  0x46   : > { %v251_v11 = vor.u32 %v250_v9, %v249_v7  ;;  %v254_v12 = vshll.u32 %v253_v10, 23 }
  0x48   : > { %v255_v13 = vor.u32 4788187, %v254_v12  ;;  %v258_v14 = vcvt.s32.f32 %v251_v11 }
  0x4a   : > { %v256_v15 = vand.u32 2147483647, %v255_v13 }
  0x4c   : > { %v259_v17 = vmul.f32 %v258_v14, %v256_v15 }
  0x4e   : > { %v260_v18 = vxor.u32 2147483648, %v259_v17 }
  0x50   : > { %v261_v20 = vsel %vm178_vm7, %v260_v18, %v259_v17  ;;  %vm642_vm7 = vcmask 130048  }
  0x51   : > { %v264_v21 = vsel %vm177_vm8, %v1002_v2, %v261_v20 }
  0x52   : > { %945 = vcosq.f32 %v264_v21 }
  0x53   : > { %947 = vsinq.f32 %v264_v21 }
  0x5c   : > { %v946_v26 = vpop.eup %945 }
  0x5d   : > { %v948_v27 = vpop.eup %947  ;;  %v275_v28 = vxor.u32 2147483648, %v946_v26 }
  0x5e   : > { %v272_v5 = vxor.u32 2147483648, %v948_v27 }
  0x5f   : > { %v276_v29 = vsel %vm274_vm9, %v275_v28, %v948_v27  ;;  %v380_v30 = vsel %vm378_vm10, %v275_v28, %v948_v27 }
  0x60   : > { %v273_v31 = vsel %vm271_vm11, %v946_v26, %v272_v5  ;;  %v377_v32 = vsel %vm375_vm12, %v946_v26, %v272_v5 }
  0x61   : > { %v277_v33 = vsel %vm270_vm13, %v273_v31, %v276_v29  ;;  %v381_v34 = vsel %vm374_vm14, %v377_v32, %v380_v30 }
  0x62   : > { %v278_v35 = vsel %vm268_vm15, nan, %v277_v33  ;;  %v382_v36 = vsel %vm268_vm15, nan, %v381_v34 }
  0x63   : > { %v384_v37 = vrot.slane %v278_v35, 5  ;;  %v389_v38 = vrot.slane %v382_v36, 5 }
  0x65   : > { %v385_v40 = vrot.slane %v384_v37, 4  ;;  %v390_v41 = vrot.slane %v389_v38, 4 }
  0x67   : > { %v387_v42 = vmul.f32 %v385_v40, %v278_v35  ;;  %v392_v43 = vmul.f32 %v390_v41, %v278_v35  ;;  %v393_v44 = vmul.f32 %v385_v40, %v382_v36  ;;  %v394_v45 = vmul.f32 %v390_v41, %v382_v36 }
  0x69   : > { %v396_v47 = vrot.slane %v387_v42, 6  ;;  %v401_v2 = vrot.slane %v392_v43, 6  ;;  %v406_v48 = vrot.slane %v393_v44, 6  ;;  %v411_v49 = vrot.slane %v394_v45, 6 }
  0x6b   : > { %v397_v50 = vrot.slane %v396_v47, 4  ;;  %v402_v51 = vrot.slane %v401_v2, 4  ;;  %v407_v52 = vrot.slane %v406_v48, 4  ;;  %v412_v53 = vrot.slane %v411_v49, 4 }
  0x6d   : > { %v1023_v54 = vmul.f32 %v397_v50, %v387_v42  ;;  %v1025_v55 = vmul.f32 %v402_v51, %v387_v42  ;;  %v1027_v57 = vmul.f32 %v407_v52, %v387_v42  ;;  %v1029_v58 = vmul.f32 %v412_v53, %v387_v42 }
  0x6e   : > { %v1033_v60 = vmul.f32 %v397_v50, %v393_v44  ;;  %v420_v61 = vmul.f32 %v402_v51, %v393_v44  ;;  %v1035_v62 = vmul.f32 %v407_v52, %v393_v44  ;;  %v1037_v63 = vmul.f32 %v412_v53, %v393_v44 }
  0x6f   : > { %v1039_v1 = vmul.f32 %v397_v50, %v392_v43  ;;  %v1041_v3 = vmul.f32 %v402_v51, %v392_v43  ;;  %v1043_v4 = vmul.f32 %v407_v52, %v392_v43  ;;  %v1045_v6 = vmul.f32 %v397_v50, %v394_v45 }
  0x70   : > { %v1047_v7 = vmul.f32 %v412_v53, %v392_v43  ;;  %v1049_v8 = vmul.f32 %v402_v51, %v394_v45  ;;  %v435_v9 = vrot.slane %v1023_v54, %v434_v56  ;;  %v446_v10 = vrot.slane %v1025_v55, %v434_v56 }
  0x71   : > { %v1053_v11 = vmul.f32 %v407_v52, %v394_v45  ;;  %v1055_v12 = vmul.f32 %v412_v53, %v394_v45  ;;  %v457_v13 = vrot.slane %v1027_v57, %v434_v56  ;;  %v468_v14 = vrot.slane %v1029_v58, %v434_v56 }
  0x72   : > { %v523_v15 = vrot.slane %v1033_v60, %v434_v56  ;;  %v534_v16 = vrot.slane %v420_v61, %v434_v56  ;;  %v545_v17 = vrot.slane %v1035_v62, %v434_v56  ;;  %v556_v18 = vrot.slane %v1037_v63, %v434_v56 }
  0x73   : > { %v479_v19 = vrot.slane %v1039_v1, %v434_v56  ;;  %v490_v20 = vrot.slane %v1041_v3, %v434_v56  ;;  %v501_v21 = vrot.slane %v1043_v4, %v434_v56  ;;  %v567_v22 = vrot.slane %v1045_v6, %v434_v56 }
  0x74   : > { %v512_v23 = vrot.slane %v1047_v7, %v434_v56  ;;  %v578_v24 = vrot.slane %v1049_v8, %v434_v56  ;;  %v605_v25 = vsel %vm603_vm0, %v435_v9, %v446_v10  ;;  %v625_v26 = vsel %vm603_vm0, %v523_v15, %v534_v16 }
  0x75   : > { %v589_v27 = vrot.slane %v1053_v11, %v434_v56  ;;  %v600_v28 = vrot.slane %v1055_v12, %v434_v56  ;;  %v608_v5 = vsel %vm606_vm1, %v605_v25, %v457_v13  ;;  %v627_v29 = vsel %vm606_vm1, %v625_v26, %v545_v17  ;;  %v640_v13 = vld [vmem:[%s1161_s1 + $0x10] sm:$0xff] }
  0x76   : > { %v611_v30 = vsel %vm609_vm2, %v608_v5, %v468_v14  ;;  %v629_v31 = vsel %vm609_vm2, %v627_v29, %v556_v18  ;;  %v431_v32 = vrot.slane %v1023_v54, %v1031_v59  ;;  %v442_v33 = vrot.slane %v1025_v55, %v1031_v59 }
  0x77   : > { %v614_v34 = vsel %vm612_vm3, %v611_v30, %v479_v19  ;;  %v631_v35 = vsel %vm612_vm3, %v629_v31, %v567_v22  ;;  %v453_v36 = vrot.slane %v1027_v57, %v1031_v59  ;;  %v464_v37 = vrot.slane %v1029_v58, %v1031_v59 }
  0x78   : > { %v617_v38 = vsel %vm615_vm4, %v614_v34, %v490_v20  ;;  %v633_v39 = vsel %vm615_vm4, %v631_v35, %v578_v24  ;;  %v519_v40 = vrot.slane %v1033_v60, %v1031_v59  ;;  %v530_v41 = vrot.slane %v420_v61, %v1031_v59  ;;  %v756_v34 = vld [vmem:[%s1162_s2] sm:$0xf] }
  0x79   : > { %v620_v42 = vsel %vm618_vm5, %v617_v38, %v501_v21  ;;  %v635_v43 = vsel %vm618_vm5, %v633_v39, %v589_v27  ;;  %v475_v44 = vrot.slane %v1039_v1, %v1031_v59  ;;  %v541_v45 = vrot.slane %v1035_v62, %v1031_v59 }
  0x7a   : > { %v623_v46 = vsel %vm621_vm6, %v620_v42, %v512_v23  ;;  %v637_v47 = vsel %vm621_vm6, %v635_v43, %v600_v28  ;;  %v486_v2 = vrot.slane %v1041_v3, %v1031_v59  ;;  %v552_v48 = vrot.slane %v1037_v63, %v1031_v59 }
  0x7b   : > { %v916_v49 = vpack.c.bf16 %v637_v47, %v623_v46  ;;  %v497_v50 = vrot.slane %v1043_v4, %v1031_v59  ;;  %v563_v51 = vrot.slane %v1045_v6, %v1031_v59  ;;  %v604_v52 = vsel %vm603_vm0, %v431_v32, %v442_v33 }
  0x7c   : > { %v508_v53 = vrot.slane %v1047_v7, %v1031_v59  ;;  %v574_v54 = vrot.slane %v1049_v8, %v1031_v59  ;;  %v607_v55 = vsel %vm606_vm1, %v604_v52, %v453_v36  ;;  %v624_v56 = vsel %vm603_vm0, %v519_v40, %v530_v41 }
  0x7d   : > { %917 = vmatprep.subr.bf16.mxu0 %v916_v49  ;;  %v585_v57 = vrot.slane %v1053_v11, %v1031_v59  ;;  %v610_v58 = vsel %vm609_vm2, %v607_v55, %v464_v37  ;;  %v626_v60 = vsel %vm606_vm1, %v624_v56, %v541_v45  ;;  %924 = vmatprep.subr.bf16.mxu1 %v916_v49  ;;  %v641_v11 = vld [vmem:[%s1161_s1 + $0x18] sm:$0xff] }
  0x7e   : > { %v596_v61 = vrot.slane %v1055_v12, %v1031_v59  ;;  %v613_v62 = vsel %vm612_vm3, %v610_v58, %v475_v44  ;;  %v628_v63 = vsel %vm609_vm2, %v626_v60, %v552_v48  ;;  %v638_v59 = vld [vmem:[%s1161_s1] sm:$0xff]  ;;  %v639_v12 = vld [vmem:[%s1161_s1 + $0x8] sm:$0xff] }
  0x7f   : > { %v616_v1 = vsel %vm615_vm4, %v613_v62, %v486_v2  ;;  %v630_v3 = vsel %vm612_vm3, %v628_v63, %v563_v51 }
  0x80   : > { %v619_v4 = vsel %vm618_vm5, %v616_v1, %v497_v50  ;;  %v632_v6 = vsel %vm615_vm4, %v630_v3, %v574_v54 }
  0x81   : > { %v622_v7 = vsel %vm621_vm6, %v619_v4, %v508_v53  ;;  %v634_v8 = vsel %vm618_vm5, %v632_v6, %v585_v57 }
  0x82   : > { %v636_v9 = vsel %vm621_vm6, %v634_v8, %v596_v61 }
  0x83   : > { %v918_v10 = vpack.c.bf16 %v636_v9, %v622_v7 }
  0x85   : > { %919 = vmatpush1.bf16.msra.mxu0 %v918_v10  ;;  %925 = vmatpush1.bf16.msra.mxu1 %v918_v10 }
  0x88   : > { %909 = vmatmul.mubr.msk.f32.vlgmr.msra.gmra.mrb[0].mxu0 %vm642_vm7, %v638_v59  ;;  %912 = vmatmul.mubr.msk.f32.vlgmr.msra.gmra.mrb[0].mxu1 %vm642_vm7, %v641_v11 }
  0x89   : > { %725 = vmatprep.mubr.f32.mxu0 %v957_v0  ;;  %824 = vmatprep.mubr.f32.mxu1 %v957_v0 }
  0x8c   : > { %910 = vmatmul.mubr.msk.f32.gmra.mrb[2].mxu0 %vm642_vm7, %v639_v12 }
  0x8d   : > { %731 = vmatprep.mubr.f32.mxu0 %v957_v0 }
  0x90   : > { %911 = vmatmul.mubr.msk.f32.gmra.mrb[4].mxu0 %vm642_vm7, %v640_v13 }
 0x15b   : > { %v721_v14 = vpop.f32.mrb[0].mxu0  ;;  %v739_v15 = vpop.f32.mrb[0].mxu1 }
 0x15c   : > { %v723_v16 = vpop.f32.mrb[1].mxu0  ;;  %v741_v17 = vpop.f32.mrb[1].mxu1  ;;  %v750_v18 = vmul.f32 %v739_v15, %v739_v15  ;;  %v744_v26 = vmul.f32 %v721_v14, %v721_v14 }
 0x15d   : > { %v751_v20 = vmul.f32 %v741_v17, %v741_v17  ;;  %v745_v5 = vmul.f32 %v723_v16, %v723_v16 }
 0x15f   : > { %v727_v19 = vpop.f32.mrb[2].mxu0 }
 0x160   : > { %v746_v21 = vmul.f32 %v727_v19, %v727_v19  ;;  %v729_v22 = vpop.f32.mrb[3].mxu0 }
 0x161   : > { %v747_v23 = vmul.f32 %v729_v22, %v729_v22 }
 0x162   : > { %v754_v24 = vadd.f32 %v750_v18, %v746_v21 }
 0x163   : > { %v755_v25 = vadd.f32 %v751_v20, %v747_v23  ;;  %v733_v0 = vpop.f32.mrb[4].mxu0 }
 0x164   : > { %v748_v27 = vmul.f32 %v733_v0, %v733_v0  ;;  %v735_v28 = vpop.f32.mrb[5].mxu0 }
 0x165   : > { %v749_v29 = vmul.f32 %v735_v28, %v735_v28 }
 0x166   : > { %v752_v30 = vadd.f32 %v748_v27, %v744_v26 }
 0x167   : > { %v753_v31 = vadd.f32 %v749_v29, %v745_v5 }
 0x168   : > { %v922_v32 = vpack.c.bf16 %v754_v24, %v752_v30 }
 0x169   : > { %v920_v33 = vpack.c.bf16 %v755_v25, %v753_v31 }
 0x16b   : > { %921 = vmatprep.subr.bf16.mxu1 %v920_v33 }
 0x16c   : > { %923 = vmatpush1.bf16.msra.mxu1 %v922_v32 }
 0x16f   : > { %913 = vmatmul.mubr.msk.f32.vlgmr.msra.gmra.mrb[2].mxu1 %vm642_vm7, %v756_v34 }
 0x242   : > { %v826_v35 = vpop.f32.mrb[2].mxu1 }
 0x243   : > { %v828_v36 = vpop.f32.mrb[3].mxu1 }
 0x244   : > { %v833_v37 = vcombine.low %v826_v35, %v828_v36 }
 0x246   : > { %835 = vst [vmem:[%s172_s4] sm:$0xff] %v833_v37 }
 0x247 PF: > { %s13_s12 = sadd.s32 1, %s955_s12  }
 0x248   : > { %p10_p4 = scmp.ge.s32.totalorder %s13_s12, 4  }
 0x24a   :  { %12 = sbr.rel (!%p10_p4) target bundleno = 1 (0x1), region = 62 }

// kernel: net_forward.3
= control target key start
LH: loop header
LB: loop body
LE: loop exit
PB: predicated region body
PF: predicated region fallthrough
CT: control target
= control target key end

     0   :  { %v846_v43 = vmov 1983009808   ;;  %v134_v45 = vlaneseq  ;;  %s1239_s0 = inlined_call_operand.vmem [shape: f32[2,784], index: 0, kind: input, shape index: {}]   ;;  %s1240_s1 = inlined_call_operand.vmem [shape: f32[784,64], index: 1, kind: input, shape index: {}]   ;;  %s1241_s2 = inlined_call_operand.vmem [shape: f32[1,64], index: 2, kind: input, shape index: {}]   ;;  %s1242_s3 = inlined_call_operand.vmem [shape: f32[64,128], index: 3, kind: input, shape index: {}]   ;;  %s1243_s4 = inlined_call_operand.vmem [shape: f32[1,128], index: 4, kind: input, shape index: {}]   ;;  %s1244_s5 = inlined_call_operand.hbm [shape: f32[2,128], index: 5, kind: output, shape index: {}]  }
   0x1   :  { %v39_v0 = vld [vmem:[%s1240_s1 + $0x80] sm:$0xff]  ;;  %v40_v1 = vld [vmem:[%s1240_s1 + $0x88] sm:$0xff]  ;;  %v41_v11 = vld [vmem:[%s1240_s1 + $0x90] sm:$0xff]  ;;  %v132_v44 = vunpack.c.l.s4 %v846_v43 }
   0x2   :  { %v23_v2 = vld [vmem:[%s1240_s1] sm:$0xff]  ;;  %v704_v3 = vpack.c.bf16 %v40_v1, %v39_v0  ;;  %v24_v4 = vld [vmem:[%s1240_s1 + $0x8] sm:$0xff]  ;;  %v42_v13 = vld [vmem:[%s1240_s1 + $0x98] sm:$0xff]  ;;  %v135_v60 = vshrl.u32 %v134_v45, 7 }
   0x3   :  { %v71_v5 = vld [vmem:[%s1240_s1 + $0x180] sm:$0xff]  ;;  %v72_v6 = vld [vmem:[%s1240_s1 + $0x188] sm:$0xff]  ;;  %v706_v7 = vpack.c.bf16 %v24_v4, %v23_v2  ;;  %v25_v14 = vld [vmem:[%s1240_s1 + $0x10] sm:$0xff]  ;;  %v708_v16 = vpack.c.bf16 %v42_v13, %v41_v11  ;;  %v133_v59 = vunpack.c.0.s8 %v132_v44 }
   0x4   :  { %v736_v8 = vpack.c.bf16 %v72_v6, %v71_v5  ;;  %v55_v9 = vld [vmem:[%s1240_s1 + $0x100] sm:$0xff]  ;;  %v56_v10 = vld [vmem:[%s1240_s1 + $0x108] sm:$0xff]  ;;  %705 = vmatprep.subr.bf16.mxu0 %v704_v3  ;;  %v26_v15 = vld [vmem:[%s1240_s1 + $0x18] sm:$0xff] }
   0x5   :  { %v738_v12 = vpack.c.bf16 %v56_v10, %v55_v9  ;;  %707 = vmatpush3.bf16.msra.mxu0 %v706_v7  ;;  %v710_v17 = vpack.c.bf16 %v26_v15, %v25_v14  ;;  %v73_v18 = vld [vmem:[%s1240_s1 + $0x190] sm:$0xff]  ;;  %v74_v19 = vld [vmem:[%s1240_s1 + $0x198] sm:$0xff]  ;;  %v43_v23 = vld [vmem:[%s1240_s1 + $0xa0] sm:$0xff]  ;;  %v1025_v10 = vsub.s32 %v133_v59, %v135_v60 }
   0x6   :  { %737 = vmatprep.subr.bf16.mxu1 %v736_v8  ;;  %v57_v20 = vld [vmem:[%s1240_s1 + $0x110] sm:$0xff]  ;;  %v740_v21 = vpack.c.bf16 %v74_v19, %v73_v18  ;;  %v58_v22 = vld [vmem:[%s1240_s1 + $0x118] sm:$0xff]  ;;  %v44_v24 = vld [vmem:[%s1240_s1 + $0xa8] sm:$0xff]  ;;  %709 = vmatprep.subr.bf16.mxu0 %v708_v16 }
   0x7   :  { %739 = vmatpush3.bf16.msra.mxu1 %v738_v12  ;;  %v742_v25 = vpack.c.bf16 %v58_v22, %v57_v20  ;;  %v712_v26 = vpack.c.bf16 %v44_v24, %v43_v23  ;;  %v27_v27 = vld [vmem:[%s1240_s1 + $0x20] sm:$0xff]  ;;  %v28_v28 = vld [vmem:[%s1240_s1 + $0x28] sm:$0xff]  ;;  %v45_v35 = vld [vmem:[%s1240_s1 + $0xb0] sm:$0xff] }
   0x8   :  { %v75_v29 = vld [vmem:[%s1240_s1 + $0x1a0] sm:$0xff]  ;;  %741 = vmatprep.subr.bf16.mxu1 %v740_v21  ;;  %v76_v30 = vld [vmem:[%s1240_s1 + $0x1a8] sm:$0xff]  ;;  %v714_v33 = vpack.c.bf16 %v28_v28, %v27_v27  ;;  %v46_v36 = vld [vmem:[%s1240_s1 + $0xb8] sm:$0xff] }
   0x9   :  { %v59_v31 = vld [vmem:[%s1240_s1 + $0x120] sm:$0xff]  ;;  %v60_v32 = vld [vmem:[%s1240_s1 + $0x128] sm:$0xff]  ;;  %711 = vmatpush3.bf16.msra.mxu0 %v710_v17  ;;  %v744_v34 = vpack.c.bf16 %v76_v30, %v75_v29  ;;  %v29_v37 = vld [vmem:[%s1240_s1 + $0x30] sm:$0xff]  ;;  %v716_v39 = vpack.c.bf16 %v46_v36, %v45_v35 }
   0xa   :  { %713 = vmatprep.subr.bf16.mxu0 %v712_v26  ;;  %v746_v38 = vpack.c.bf16 %v60_v32, %v59_v31  ;;  %v30_v40 = vld [vmem:[%s1240_s1 + $0x38] sm:$0xff]  ;;  %v77_v41 = vld [vmem:[%s1240_s1 + $0x1b0] sm:$0xff]  ;;  %v47_v49 = vld [vmem:[%s1240_s1 + $0xc0] sm:$0xff] }
   0xb   :  { %743 = vmatpush3.bf16.msra.mxu1 %v742_v25  ;;  %v78_v42 = vld [vmem:[%s1240_s1 + $0x1b8] sm:$0xff]  ;;  %v61_v47 = vld [vmem:[%s1240_s1 + $0x130] sm:$0xff]  ;;  %v48_v50 = vld [vmem:[%s1240_s1 + $0xc8] sm:$0xff]  ;;  %v718_v51 = vpack.c.bf16 %v30_v40, %v29_v37 }
   0xc   :  { %745 = vmatprep.subr.bf16.mxu1 %v744_v34  ;;  %v748_v46 = vpack.c.bf16 %v78_v42, %v77_v41  ;;  %v62_v48 = vld [vmem:[%s1240_s1 + $0x138] sm:$0xff]  ;;  %v79_v52 = vld [vmem:[%s1240_s1 + $0x1c0] sm:$0xff]  ;;  %v80_v53 = vld [vmem:[%s1240_s1 + $0x1c8] sm:$0xff]  ;;  %v720_v55 = vpack.c.bf16 %v48_v50, %v47_v49 }
   0xd   :  { %715 = vmatpush3.bf16.msra.mxu0 %v714_v33  ;;  %v750_v54 = vpack.c.bf16 %v62_v48, %v61_v47  ;;  %v31_v56 = vld [vmem:[%s1240_s1 + $0x40] sm:$0xff]  ;;  %v32_v57 = vld [vmem:[%s1240_s1 + $0x48] sm:$0xff]  ;;  %v752_v61 = vpack.c.bf16 %v80_v53, %v79_v52  ;;  %v49_v63 = vld [vmem:[%s1240_s1 + $0xd0] sm:$0xff] }
   0xe   :  { %717 = vmatprep.subr.bf16.mxu0 %v716_v39  ;;  %v63_v58 = vld [vmem:[%s1240_s1 + $0x140] sm:$0xff]  ;;  %v64_v62 = vld [vmem:[%s1240_s1 + $0x148] sm:$0xff]  ;;  %v50_v0 = vld [vmem:[%s1240_s1 + $0xd8] sm:$0xff]  ;;  %v722_v3 = vpack.c.bf16 %v32_v57, %v31_v56 }
   0xf   :  { %747 = vmatpush3.bf16.msra.mxu1 %v746_v38  ;;  %v81_v1 = vld [vmem:[%s1240_s1 + $0x1d0] sm:$0xff]  ;;  %v82_v2 = vld [vmem:[%s1240_s1 + $0x1d8] sm:$0xff]  ;;  %v754_v5 = vpack.c.bf16 %v64_v62, %v63_v58  ;;  %v724_v6 = vpack.c.bf16 %v50_v0, %v49_v63  ;;  %v51_v12 = vld [vmem:[%s1240_s1 + $0xe0] sm:$0xff] }
  0x10   :  { %749 = vmatprep.subr.bf16.mxu1 %v748_v46  ;;  %v33_v4 = vld [vmem:[%s1240_s1 + $0x50] sm:$0xff]  ;;  %v34_v7 = vld [vmem:[%s1240_s1 + $0x58] sm:$0xff]  ;;  %v756_v11 = vpack.c.bf16 %v82_v2, %v81_v1  ;;  %v52_v13 = vld [vmem:[%s1240_s1 + $0xe8] sm:$0xff] }
  0x11   :  { %719 = vmatpush3.bf16.msra.mxu0 %v718_v51  ;;  %v65_v8 = vld [vmem:[%s1240_s1 + $0x150] sm:$0xff]  ;;  %v66_v9 = vld [vmem:[%s1240_s1 + $0x158] sm:$0xff]  ;;  %v83_v14 = vld [vmem:[%s1240_s1 + $0x1e0] sm:$0xff]  ;;  %v726_v16 = vpack.c.bf16 %v34_v7, %v33_v4  ;;  %v728_v19 = vpack.c.bf16 %v52_v13, %v51_v12 }
  0x12   :  { %721 = vmatprep.subr.bf16.mxu0 %v720_v55  ;;  %v84_v15 = vld [vmem:[%s1240_s1 + $0x1e8] sm:$0xff]  ;;  %v758_v17 = vpack.c.bf16 %v66_v9, %v65_v8  ;;  %v21_v18 = vld [vmem:[%s1239_s0] sm:$0xff]  ;;  %v53_v27 = vld [vmem:[%s1240_s1 + $0xf0] sm:$0xff] }
  0x13   :  { %751 = vmatpush3.bf16.msra.mxu1 %v750_v54  ;;  %v35_v20 = vld [vmem:[%s1240_s1 + $0x60] sm:$0xff]  ;;  %v36_v21 = vld [vmem:[%s1240_s1 + $0x68] sm:$0xff]  ;;  %v137_v23 = vrot.slane %v21_v18, %v1025_v10  ;;  %v130_v24 = vcombine.high %v21_v18, %v21_v18  ;;  %v760_v25 = vpack.c.bf16 %v84_v15, %v83_v14  ;;  %v54_v28 = vld [vmem:[%s1240_s1 + $0xf8] sm:$0xff] }
  0x14   :  { %753 = vmatprep.subr.bf16.mxu1 %v752_v61  ;;  %v67_v22 = vld [vmem:[%s1240_s1 + $0x160] sm:$0xff]  ;;  %v68_v26 = vld [vmem:[%s1240_s1 + $0x168] sm:$0xff]  ;;  %v85_v29 = vld [vmem:[%s1240_s1 + $0x1f0] sm:$0xff]  ;;  %v730_v33 = vpack.c.bf16 %v36_v21, %v35_v20  ;;  %v732_v35 = vpack.c.bf16 %v54_v28, %v53_v27 }
  0x15   :  { %723 = vmatpush3.bf16.msra.mxu0 %v722_v3  ;;  %v86_v30 = vld [vmem:[%s1240_s1 + $0x1f8] sm:$0xff]  ;;  %v145_v31 = vcombine.high %v137_v23, %v137_v23  ;;  %v144_v32 = vrot.slane %v130_v24, %v1025_v10  ;;  %v762_v34 = vpack.c.bf16 %v68_v26, %v67_v22  ;;  %v37_v36 = vld [vmem:[%s1240_s1 + $0x70] sm:$0xff]  ;;  %v103_v42 = vld [vmem:[%s1240_s1 + $0x280] sm:$0xff] }
  0x16   :  { %725 = vmatprep.subr.bf16.mxu0 %v724_v6  ;;  %v38_v37 = vld [vmem:[%s1240_s1 + $0x78] sm:$0xff]  ;;  %v69_v38 = vld [vmem:[%s1240_s1 + $0x170] sm:$0xff]  ;;  %v764_v40 = vpack.c.bf16 %v86_v30, %v85_v29  ;;  %v104_v43 = vld [vmem:[%s1240_s1 + $0x288] sm:$0xff] }
  0x17   :  { %755 = vmatpush3.bf16.msra.mxu1 %v754_v5  ;;  %v146_v39 = vcombine.high %v144_v32, %v144_v32  ;;  %236 = vmatprep.mubr.f32.mxu0 %v145_v31  ;;  %v70_v41 = vld [vmem:[%s1240_s1 + $0x178] sm:$0xff]  ;;  %v734_v44 = vpack.c.bf16 %v38_v37, %v37_v36  ;;  %v768_v46 = vpack.c.bf16 %v104_v43, %v103_v42  ;;  %v87_v47 = vld [vmem:[%s1240_s1 + $0x200] sm:$0xff]  ;;  %v88_v48 = vld [vmem:[%s1240_s1 + $0x208] sm:$0xff] }
  0x18   :  { %757 = vmatprep.subr.bf16.mxu1 %v756_v11  ;;  %v766_v45 = vpack.c.bf16 %v70_v41, %v69_v38  ;;  %v105_v49 = vld [vmem:[%s1240_s1 + $0x290] sm:$0xff]  ;;  %v106_v50 = vld [vmem:[%s1240_s1 + $0x298] sm:$0xff]  ;;  %v770_v51 = vpack.c.bf16 %v88_v48, %v87_v47  ;;  %v22_v53 = vld [vmem:[%s1239_s0 + $0x8] sm:$0x3f] }
  0x19   :  { %727 = vmatpush3.bf16.msra.mxu0 %v726_v16  ;;  %306 = vmatprep.mubr.f32.mxu1 %v146_v39  ;;  %v89_v52 = vld [vmem:[%s1240_s1 + $0x210] sm:$0xff]  ;;  %v119_v54 = vld [vmem:[%s1240_s1 + $0x300] sm:$0xff]  ;;  %v772_v55 = vpack.c.bf16 %v106_v50, %v105_v49  ;;  %v90_v56 = vld [vmem:[%s1240_s1 + $0x218] sm:$0xff]  ;;  %v147_v57 = vcombine.high %v22_v53, %v22_v53  ;;  %v1111_v58 = vrot.slane %v22_v53, %v1025_v10 }
  0x1a   :  { %729 = vmatprep.subr.bf16.mxu0 %v728_v19  ;;  %v120_v59 = vld [vmem:[%s1240_s1 + $0x308] sm:$0xff] }
  0x1b   :  { %759 = vmatpush3.bf16.msra.mxu1 %v758_v17 }
  0x1c   :  { %761 = vmatprep.subr.bf16.mxu1 %v760_v25 }
  0x1d   :  { %731 = vmatpush3.bf16.msra.mxu0 %v730_v33 }
  0x1e   :  { %733 = vmatprep.subr.bf16.mxu0 %v732_v35 }
  0x1f   :  { %763 = vmatpush3.bf16.msra.mxu1 %v762_v34 }
  0x20   :  { %765 = vmatprep.subr.bf16.mxu1 %v764_v40 }
  0x21   :  { %735 = vmatpush3.bf16.msra.mxu0 %v734_v44 }
  0x22   :  { %769 = vmatprep.subr.bf16.mxu0 %v768_v46 }
  0x23   :  { %767 = vmatpush3.bf16.msra.mxu1 %v766_v45 }
  0x24   :  { %10 = vsyncpa [#allocation3], 0  ;;  %v107_v60 = vld [vmem:[%s1240_s1 + $0x2a0] sm:$0xff]  ;;  %v108_v61 = vld [vmem:[%s1240_s1 + $0x2a8] sm:$0xff]  ;;  %v847_v62 = vmov 0.0|0.0   ;;  %v801_v63 = vpack.c.bf16 %v120_v59, %v119_v54  ;;  %237 = vmatmul.mubr.f32.vlgmr.msra.gmra.mrb[0].mxu0 %v137_v23  ;;  %v162_v0 = vcombine.high %v1111_v58, %v1111_v58  ;;  %v774_v1 = vpack.c.bf16 %v90_v56, %v89_v52 }
  0x25   :  { %800 = vmatprep.subr.bf16.mxu1 %v847_v62  ;;  %771 = vmatpush3.bf16.msra.mxu0 %v770_v51  ;;  %v776_v2 = vpack.c.bf16 %v108_v61, %v107_v60  ;;  %v91_v3 = vld [vmem:[%s1240_s1 + $0x220] sm:$0xff]  ;;  %v92_v4 = vld [vmem:[%s1240_s1 + $0x228] sm:$0xff]  ;;  %v161_v5 = vrot.slane %v147_v57, %v1025_v10  ;;  %v109_v6 = vld [vmem:[%s1240_s1 + $0x2b0] sm:$0xff]  ;;  %vm848_vm0 = vmmov 0   ;;  %v849_v8 = vmov 0.0  }
  0x26   :  { %307 = vmatmul.mubr.f32.vlgmr.msra.gmra.mrb[0].mxu1 %v144_v32  ;;  %773 = vmatprep.subr.bf16.mxu0 %v772_v55  ;;  %v110_v7 = vld [vmem:[%s1240_s1 + $0x2b8] sm:$0xff]  ;;  %vm169_vm1 = vcmask 130048   ;;  %v778_v9 = vpack.c.bf16 %v92_v4, %v91_v3  ;;  %v93_v11 = vld [vmem:[%s1240_s1 + $0x230] sm:$0xff]  ;;  %v111_v13 = vld [vmem:[%s1240_s1 + $0x2c0] sm:$0xff]  ;;  %vm468_vm2 = vcmask 523264  }
  0x27   :  { %376 = vmatprep.mubr.f32.mxu0 %v162_v0  ;;  %802 = vmatpush3.bf16.msra.mxu1 %v801_v63  ;;  %v780_v10 = vpack.c.bf16 %v110_v7, %v109_v6  ;;  %v94_v12 = vld [vmem:[%s1240_s1 + $0x238] sm:$0xff]  ;;  %v112_v14 = vld [vmem:[%s1240_s1 + $0x2c8] sm:$0xff]  ;;  %v95_v17 = vld [vmem:[%s1240_s1 + $0x240] sm:$0xff] }
  0x28   :  { %682 = vmatprep.mubr.msk.f32.mxu1 %vm848_vm0, %v849_v8  ;;  %803 = vmatprep.subr.bf16.mxu1 %v847_v62  ;;  %v782_v15 = vpack.c.bf16 %v94_v12, %v93_v11  ;;  %v784_v16 = vpack.c.bf16 %v112_v14, %v111_v13  ;;  %v96_v18 = vld [vmem:[%s1240_s1 + $0x248] sm:$0xff]  ;;  %v113_v19 = vld [vmem:[%s1240_s1 + $0x2d0] sm:$0xff]  ;;  %v114_v20 = vld [vmem:[%s1240_s1 + $0x2d8] sm:$0xff] }
  0x29   :  { %775 = vmatpush3.bf16.msra.mxu0 %v774_v1  ;;  %v786_v21 = vpack.c.bf16 %v96_v18, %v95_v17  ;;  %v788_v22 = vpack.c.bf16 %v114_v20, %v113_v19  ;;  %v97_v23 = vld [vmem:[%s1240_s1 + $0x250] sm:$0xff]  ;;  %v98_v24 = vld [vmem:[%s1240_s1 + $0x258] sm:$0xff]  ;;  %v115_v25 = vld [vmem:[%s1240_s1 + $0x2e0] sm:$0xff] }
  0x2a   :  { %777 = vmatprep.subr.bf16.mxu0 %v776_v2  ;;  %683 = vmatmul.mubr.msk.f32.vlgmr.msra.gmra.mrb[2].mxu1 %vm169_vm1, %v161_v5  ;;  %v116_v26 = vld [vmem:[%s1240_s1 + $0x2e8] sm:$0xff]  ;;  %v790_v27 = vpack.c.bf16 %v98_v24, %v97_v23  ;;  %v99_v29 = vld [vmem:[%s1240_s1 + $0x260] sm:$0xff]  ;;  %v117_v31 = vld [vmem:[%s1240_s1 + $0x2f0] sm:$0xff] }
  0x2b   :  { %701 = vmatprep.mubr.msk.f32.mxu1 %vm848_vm0, %v849_v8  ;;  %v792_v28 = vpack.c.bf16 %v116_v26, %v115_v25  ;;  %v100_v30 = vld [vmem:[%s1240_s1 + $0x268] sm:$0xff]  ;;  %v118_v32 = vld [vmem:[%s1240_s1 + $0x2f8] sm:$0xff]  ;;  %v101_v35 = vld [vmem:[%s1240_s1 + $0x270] sm:$0xff] }
  0x2c   :  { %v794_v33 = vpack.c.bf16 %v100_v30, %v99_v29  ;;  %v796_v34 = vpack.c.bf16 %v118_v32, %v117_v31  ;;  %v102_v36 = vld [vmem:[%s1240_s1 + $0x278] sm:$0xff]  ;;  %v453_v38 = vld [vmem:[%s1242_s3] sm:$0xff]  ;;  %v454_v39 = vld [vmem:[%s1242_s3 + $0x8] sm:$0xff] }
  0x2d   :  { %779 = vmatpush3.bf16.msra.mxu0 %v778_v9  ;;  %v798_v37 = vpack.c.bf16 %v102_v36, %v101_v35  ;;  %v455_v40 = vld [vmem:[%s1242_s3 + $0x10] sm:$0xff]  ;;  %v804_v41 = vpack.c.bf16 %v454_v39, %v453_v38  ;;  %v456_v42 = vld [vmem:[%s1242_s3 + $0x18] sm:$0xff]  ;;  %v457_v44 = vld [vmem:[%s1242_s3 + $0x20] sm:$0xff] }
  0x2e   :  { %781 = vmatprep.subr.bf16.mxu0 %v780_v10  ;;  %v807_v43 = vpack.c.bf16 %v456_v42, %v455_v40  ;;  %v458_v45 = vld [vmem:[%s1242_s3 + $0x28] sm:$0xff]  ;;  %v459_v47 = vld [vmem:[%s1242_s3 + $0x30] sm:$0xff]  ;;  %v460_v48 = vld [vmem:[%s1242_s3 + $0x38] sm:$0xff] }
  0x2f   :  { %805 = vmatpush3.bf16.msra.mxu1 %v804_v41  ;;  %v810_v46 = vpack.c.bf16 %v458_v45, %v457_v44  ;;  %v813_v49 = vpack.c.bf16 %v460_v48, %v459_v47  ;;  %v557_v51 = vld [vmem:[%s1241_s2] ss:$0 sm:$0xff]  ;;  %s850_s2 = smov [#allocation2]  }
  0x30   :  { %806 = vmatprep.subr.bf16.mxu1 %v847_v62  ;;  %v559_v3 = vld [vmem:[%s1243_s4] ss:$0 sm:$0xff]  ;;  %s549_s8 = sshll.u32 %s850_s2, 4  ;;  %s550_s8 = int_to_ptr.vmem [resolvable:$true] %s549_s8 }
  0x31   :  { %783 = vmatpush3.bf16.msra.mxu0 %v782_v15  ;;  %s822_s9 = scalar_lea.vmem %s550_s8, 32  ;;  %p827_p1 = scmp.lt.s32.totalorder %s550_s8, %s550_s8 }
  0x32   :  { %785 = vmatprep.subr.bf16.mxu0 %v784_v16  ;;  %p823_p0 = scmp.ne.s32.totalorder %s550_s8, %s822_s9  ;;  %p828_p2 = scmp.lt.s32.totalorder %s822_s9, %s822_s9 }
  0x33   :  { %808 = vmatpush3.bf16.msra.mxu1 %v807_v43 }
  0x34   :  { %809 = vmatprep.subr.bf16.mxu1 %v847_v62  ;;  %p829_p3 = por %p828_p2, %p827_p1 }
  0x35   :  { %787 = vmatpush3.bf16.msra.mxu0 %v786_v21 }
  0x36   :  { %789 = vmatprep.subr.bf16.mxu0 %v788_v22  ;;  %p830_p4 = pnand %p829_p3, %p823_p0 }
  0x37   :  { %811 = vmatpush3.bf16.msra.mxu1 %v810_v46 }
  0x38   :  { %812 = vmatprep.subr.bf16.mxu1 %v847_v62 }
  0x39   :  { %791 = vmatpush3.bf16.msra.mxu0 %v790_v27 }
  0x3a   :  { %793 = vmatprep.subr.bf16.mxu0 %v792_v28 }
  0x3b   :  { %814 = vmatpush3.bf16.msra.mxu1 %v813_v49 }
  0x3d   :  { %795 = vmatpush3.bf16.msra.mxu0 %v794_v33 }
  0x3e   :  { %797 = vmatprep.subr.bf16.mxu0 %v796_v34 }
  0x41   :  { %799 = vmatpush3.bf16.msra.mxu0 %v798_v37 }
  0x44   :  { %377 = vmatmul.mubr.f32.vlgmr.msra.gmra.mrb[2].mxu0 %v1111_v58 }
  0xf7   :  { %v593_v50 = vpop.f32.mrb[0].mxu0 }
  0xf8   :  { %v594_v52 = vpop.f32.mrb[1].mxu0 }
  0xf9   :  { %v628_v53 = vpop.f32.mrb[0].mxu1  ;;  %v595_v54 = vadd.f32 %v594_v52, %v593_v50 }
  0xfa   :  { %v629_v55 = vpop.f32.mrb[1].mxu1 }
  0xfb   :  { %v630_v56 = vadd.f32 %v629_v55, %v628_v53  ;;  %v239_v57 = vadd.f32 %v595_v54, %v557_v51 }
  0xfd   :  { %v309_v58 = vadd.f32 %v630_v56, %v239_v57  ;;  %v448_v59 = vpop.f32.mrb[2].mxu1 }
  0xfe   :  { %v684_v60 = vpop.f32.mrb[3].mxu1 }
 0x117   :  { %v663_v61 = vpop.f32.mrb[2].mxu0 }
 0x118   :  { %v664_v62 = vpop.f32.mrb[3].mxu0 }
 0x119   :  { %v665_v63 = vadd.f32 %v664_v62, %v663_v61 }
 0x11b   :  { %v379_v0 = vadd.f32 %v665_v63, %v309_v58 }
 0x11d   :  { %v449_v1 = vadd.f32 %v448_v59, %v379_v0 }
 0x11f   :  { %v452_v2 = vmax.f32 %v449_v1, 0.0 }
 0x121   :  { %702 = vmatmul.mubr.msk.f32.vlgmr.msra.gmra.mrb[4].mxu1 %vm468_vm2, %v452_v2 }
 0x1f4   :  { %v538_v4 = vpop.f32.mrb[4].mxu1 }
 0x1f5   :  { %v539_v5 = vadd.f32 %v559_v3, %v538_v4  ;;  %v703_v6 = vpop.f32.mrb[5].mxu1 }
 0x1f7   :  { %542 = vst [vmem:[#allocation2] sm:$0x3] %v539_v5 }
 0x1f8   :  { %833 = shalt.err (!%p830_p4)
}
 0x1f9   :  { %s834_s12 = scalar_lea.hbm %s1244_s5, 32 }
 0x1fa   :  { %p835_p5 = scmp.ne.s32.totalorder %s1244_s5, %s834_s12  ;;  %p838_p6 = scmp.lt.u32.totalorder %s834_s12, %s1244_s5 }
 0x1fc   :  { %p840_p7 = pnand %p838_p6, %p835_p5 }
 0x1fe   :  { %843 = shalt.err (!%p840_p7)
}
 0x1ff   :  { %552 = dma.vmem_to_hbm [thread:$0]  %s550_s8, 32, %s1244_s5, [#allocation3]  }
 0x200   :  { %844 = dma.done.wait [#allocation3], 32  }
 0x201   :  { %845 = vsyncadd [#allocation3], 4294967264 }
 0x202   :  { %556 = vsyncpa [#allocation3], 1 }

</bundles_post_ra>
